<compile_context>
chip_gen: v5e
topology: v5e:2x2
jax: 0.10.0
libtpu: 0.0.40
codegen_flags: <defaults>
</compile_context>

<pallas_src>
import jax
import jax.numpy as jnp
import numpy as np
from jax.experimental import pallas as pl
from jax.experimental.pallas import tpu as pltpu


# ----------------------------------------------------------------------------
# Fused Pallas kernel: backbone stub + Bottleneck + GlobalAvgPool + fc2 + fc
# ----------------------------------------------------------------------------
def cnn_head_kernel(frames_ref, pool_sp_ref, w_arch_ref, b_arch_ref,
                    w1_ref, sb1_ref, w2_ref, sb2_ref, w3_ref, sb3_ref,
                    wfc2_ref, bfc2_ref, wfc_ref, bfc_ref,
                    s_prev_ref, s_next_ref, pool_t_ref, o_ref):
    dot = lambda a, b: jnp.dot(a, b, preferred_element_type=jnp.float32)
    relu = lambda h: jnp.maximum(h, 0.0)

    def affine(h, sb_ref):                       # folded eval-mode BatchNorm
        sb = sb_ref[...]
        return h * sb[0:1, :] + sb[1:2, :]

    # Backbone stub: spatial GAP (block-averaging matmul) + linear + ReLU.
    pooled = dot(frames_ref[...], pool_sp_ref[...])            # (N, C_img)
    x = relu(dot(pooled, w_arch_ref[...]) + b_arch_ref[...])   # (N, INPLANES)

    # Bottleneck conv1: 1x1 conv (channel matmul) + BN + ReLU.
    h1 = relu(affine(dot(x, w1_ref[...]), sb1_ref))            # (N, WIDTH)

    # Bottleneck conv2: 3x3 conv on the (T, 1) map == 3x1 conv along T with
    # padding=1.  Neighbour rows are gathered with precomputed shift matrices
    # whose zero rows implement the padding AND the per-clip boundaries.
    h_prev = dot(s_prev_ref[...], h1)                          # h1[t-1] (or 0)
    h_next = dot(s_next_ref[...], h1)                          # h1[t+1] (or 0)
    conv2 = (dot(h_prev, w2_ref[0])
             + dot(h1, w2_ref[1])
             + dot(h_next, w2_ref[2]))
    h2 = relu(affine(conv2, sb2_ref))                          # (N, WIDTH)

    # Bottleneck conv3: 1x1 conv + BN, identity residual, ReLU.
    h3 = relu(affine(dot(h2, w3_ref[...]), sb3_ref) + x)       # (N, C_OUT)

    # GlobalAvgPool2d over the (T, 1) spatial extent, per batch element.
    pooled2 = dot(pool_t_ref[...], h3)                         # (B, C_OUT)

    # fc2 (reduce_dim) then fc (classes, lane-padded to a multiple of 128).
    z = dot(pooled2, wfc2_ref[...]) + bfc2_ref[...]            # (B, REDUCE_DIM)
    o_ref[...] = dot(z, wfc_ref[...]) + bfc_ref[...]           # (B, NC_PAD)


# ----------------------------------------------------------------------------
# Wrapper: layout prep (lane-dense frames, constant pooling/shift matrices,
# lane-padded classifier) + a single pallas_call with everything in VMEM.
# ----------------------------------------------------------------------------
@jax.jit
def cnn_head_forward(xs, params):
    """xs: (B, T, C_img, H, W) -> logits (B, num_classes)."""
    B, T, C_img, H, W_sp = xs.shape
    HW = H * W_sp
    N = B * T
    NC = params["wfc"].shape[1]
    nc_pad = max(128, -(-NC // 128) * 128)       # lane-dense output width

    # Lane-dense frame layout: pixels (C*H*W) on the 128-lane axis.
    frames = xs.reshape(N, C_img * HW)

    # Spatial GAP as one MXU matmul: block-averaging matrix (C*HW, C).
    # (Shape-only constants below are folded at compile time under jit.)
    pool_sp = jnp.repeat(jnp.eye(C_img, dtype=jnp.float32), HW, axis=0) / HW

    # Precomputed 3-tap shift/selection matrices (N, N): row i selects row
    # i -/+ 1 of the same clip; zero rows at t = 0 / T-1 give the padding.
    row = jnp.arange(N, dtype=jnp.int32)[:, None]
    col = jnp.arange(N, dtype=jnp.int32)[None, :]
    s_prev = ((col == row - 1) & (row % T != 0)).astype(jnp.float32)
    s_next = ((col == row + 1) & (row % T != T - 1)).astype(jnp.float32)

    # Temporal global-average-pool matrix (B, B*T).
    pool_t = jnp.repeat(jnp.eye(B, dtype=jnp.float32), T, axis=1) / T

    # Lane-pad the classifier so the single output store is lane-dense.
    wfc_pad = jnp.pad(params["wfc"], ((0, 0), (0, nc_pad - NC)))
    bfc_pad = jnp.pad(params["bfc"], ((0, 0), (0, nc_pad - NC)))

    vmem = pl.BlockSpec(memory_space=pltpu.MemorySpace.VMEM)
    logits_pad = pl.pallas_call(
        cnn_head_kernel,
        out_shape=jax.ShapeDtypeStruct((B, nc_pad), jnp.float32),
        in_specs=[vmem] * 17,
        out_specs=vmem,
    )(frames, pool_sp, params["w_arch"], params["b_arch"],
      params["w1"], params["sb1"], params["w2"], params["sb2"],
      params["w3"], params["sb3"], params["wfc2"], params["bfc2"],
      wfc_pad, bfc_pad, s_prev, s_next, pool_t)
    return logits_pad[:, :NC]


# ----------------------------------------------------------------------------
# Pure-numpy reference (for correctness check)
# ----------------------------------------------------------------------------
def reference_forward(xs, p):
    B, T, Cimg, H, W = xs.shape
    pooled = xs.reshape(B * T, Cimg, H * W).mean(axis=-1)            # arch GAP
    feats = np.maximum(pooled @ p["w_arch"] + p["b_arch"], 0.0)      # linear+ReLU
    x = feats.reshape(B, T, -1)
    aff = lambda h, sb: h * sb[0] + sb[1]
    relu = lambda h: np.maximum(h, 0.0)
    h1 = relu(aff(np.einsum("btc,cd->btd", x, p["w1"]), p["sb1"]))
    h1p = np.pad(h1, ((0, 0), (1, 1), (0, 0)))
    conv2 = (np.einsum("btc,cd->btd", h1p[:, :-2], p["w2"][0])
             + np.einsum("btc,cd->btd", h1p[:, 1:-1], p["w2"][1])
             + np.einsum("btc,cd->btd", h1p[:, 2:], p["w2"][2]))
    h2 = relu(aff(conv2, p["sb2"]))
    h3 = relu(aff(np.einsum("btc,cd->btd", h2, p["w3"]), p["sb3"]) + x)
    pooled2 = h3.mean(axis=1)
    z = pooled2 @ p["wfc2"] + p["bfc2"]
    return z @ p["wfc"] + p["bfc"]


# ----------------------------------------------------------------------------
# Parameter init (deterministic, synthetic; BatchNorm folded to scale/bias)
# ----------------------------------------------------------------------------
def folded_bn(key, c):
    kg, kb, km, kv = jax.random.split(key, 4)
    gamma = 1.0 + 0.1 * jax.random.normal(kg, (c,), jnp.float32)
    beta = 0.1 * jax.random.normal(kb, (c,), jnp.float32)
    mean = 0.05 * jax.random.normal(km, (c,), jnp.float32)
    var = 1.0 + 0.1 * jnp.abs(jax.random.normal(kv, (c,), jnp.float32))
    scale = gamma / jnp.sqrt(var + 1e-5)
    bias = beta - mean * scale
    return jnp.stack([scale, bias], axis=0)  # (2, c)


if __name__ == "__main__":
    # Small shapes consistent with the module's forward
    B, T, C_IMG, H, W = 2, 8, 4, 16, 16
    INPLANES = 32                 # arch.inplanes analogue
    PLANES = 8                    # stand-in for the hard-coded 512
    WIDTH = PLANES * (64 // 64) * 1   # group_width (bottleneck_width=64, cardinality=1)
    EXPANSION = 4
    C_OUT = PLANES * EXPANSION    # == INPLANES -> residual adds directly (downsample=None)
    REDUCE_DIM = 16
    NUM_CLASSES = 5

    key = jax.random.PRNGKey(0)
    keys = jax.random.split(key, 16)

    def dense(k, shape, fan_in):
        return (jax.random.normal(k, shape, jnp.float32) / np.sqrt(fan_in)).astype(jnp.float32)

    params = dict(
        w_arch=dense(keys[1], (C_IMG, INPLANES), C_IMG),
        b_arch=0.1 * jax.random.normal(keys[2], (1, INPLANES), jnp.float32),
        w1=dense(keys[3], (INPLANES, WIDTH), INPLANES),
        sb1=folded_bn(keys[4], WIDTH),
        w2=dense(keys[5], (3, WIDTH, WIDTH), 3 * WIDTH),
        sb2=folded_bn(keys[6], WIDTH),
        w3=dense(keys[7], (WIDTH, C_OUT), WIDTH),
        sb3=folded_bn(keys[8], C_OUT),
        wfc2=dense(keys[9], (C_OUT, REDUCE_DIM), C_OUT),
        bfc2=0.1 * jax.random.normal(keys[10], (1, REDUCE_DIM), jnp.float32),
        wfc=dense(keys[11], (REDUCE_DIM, NUM_CLASSES), REDUCE_DIM),
        bfc=0.1 * jax.random.normal(keys[12], (1, NUM_CLASSES), jnp.float32),
    )

    # xs: (B, T, C, H, W) -- sequence of frames (PyTorch: xs[:, i, :, :, :])
    xs = jax.random.normal(keys[0], (B, T, C_IMG, H, W), jnp.float32)

    # ---- forward pass (one fused Pallas kernel) ----
    logits = cnn_head_forward(xs, params)
    logits = jax.block_until_ready(logits)

    # ---- correctness check against numpy reference ----
    p_np = {k: np.asarray(v) for k, v in params.items()}
    ref = reference_forward(np.asarray(xs), p_np)
    np.testing.assert_allclose(np.asarray(logits), ref, rtol=1e-2, atol=1e-2)

    print("KERNEL_OK")
</pallas_src>

<mosaic_0001>
module attributes {stable_mosaic.version = 11 : i64} {
  func.func @cnn_head_kernel(%arg0: memref<16x1024xf32, #tpu.memory_space<vmem>>, %arg1: memref<1024x4xf32, #tpu.memory_space<vmem>>, %arg2: memref<4x32xf32, #tpu.memory_space<vmem>>, %arg3: memref<1x32xf32, #tpu.memory_space<vmem>>, %arg4: memref<32x8xf32, #tpu.memory_space<vmem>>, %arg5: memref<2x8xf32, #tpu.memory_space<vmem>>, %arg6: memref<3x8x8xf32, #tpu.memory_space<vmem>>, %arg7: memref<2x8xf32, #tpu.memory_space<vmem>>, %arg8: memref<8x32xf32, #tpu.memory_space<vmem>>, %arg9: memref<2x32xf32, #tpu.memory_space<vmem>>, %arg10: memref<32x16xf32, #tpu.memory_space<vmem>>, %arg11: memref<1x16xf32, #tpu.memory_space<vmem>>, %arg12: memref<16x128xf32, #tpu.memory_space<vmem>>, %arg13: memref<1x128xf32, #tpu.memory_space<vmem>>, %arg14: memref<16x16xf32, #tpu.memory_space<vmem>>, %arg15: memref<16x16xf32, #tpu.memory_space<vmem>>, %arg16: memref<2x16xf32, #tpu.memory_space<vmem>>, %arg17: memref<2x128xf32, #tpu.memory_space<vmem>>) attributes {dimension_semantics = [], scalar_prefetch = 0 : i64, scratch_operands = 0 : i64, tpu.core_type = #tpu.core_type<tc>} {
    %c0 = arith.constant 0 : index
    %c0_0 = arith.constant 0 : index
    %0 = vector.load %arg0[%c0, %c0_0] : memref<16x1024xf32, #tpu.memory_space<vmem>>, vector<16x1024xf32>
    %c0_1 = arith.constant 0 : index
    %c0_2 = arith.constant 0 : index
    %1 = vector.load %arg1[%c0_1, %c0_2] : memref<1024x4xf32, #tpu.memory_space<vmem>>, vector<1024x4xf32>
    %cst = arith.constant dense<0.000000e+00> : vector<16x4xf32>
    %2 = tpu.matmul %0, %1, %cst {dimension_numbers = #tpu.dot_dimension_numbers<[1], [0], [0], [1], [0, 0, 1, 1], [], []>} : vector<16x1024xf32>, vector<1024x4xf32>, vector<16x4xf32> -> vector<16x4xf32>
    %c0_3 = arith.constant 0 : index
    %c0_4 = arith.constant 0 : index
    %3 = vector.load %arg2[%c0_3, %c0_4] : memref<4x32xf32, #tpu.memory_space<vmem>>, vector<4x32xf32>
    %cst_5 = arith.constant dense<0.000000e+00> : vector<16x32xf32>
    %4 = tpu.matmul %2, %3, %cst_5 {dimension_numbers = #tpu.dot_dimension_numbers<[1], [0], [0], [1], [0, 0, 1, 1], [], []>} : vector<16x4xf32>, vector<4x32xf32>, vector<16x32xf32> -> vector<16x32xf32>
    %c0_6 = arith.constant 0 : index
    %c0_7 = arith.constant 0 : index
    %5 = vector.load %arg3[%c0_6, %c0_7] : memref<1x32xf32, #tpu.memory_space<vmem>>, vector<1x32xf32>
    %6 = vector.broadcast %5 : vector<1x32xf32> to vector<16x32xf32>
    %7 = arith.addf %4, %6 : vector<16x32xf32>
    %cst_8 = arith.constant 0.000000e+00 : f32
    %8 = vector.broadcast %cst_8 : f32 to vector<16x32xf32>
    %9 = arith.maximumf %7, %8 : vector<16x32xf32>
    %c0_9 = arith.constant 0 : index
    %c0_10 = arith.constant 0 : index
    %10 = vector.load %arg4[%c0_9, %c0_10] : memref<32x8xf32, #tpu.memory_space<vmem>>, vector<32x8xf32>
    %cst_11 = arith.constant dense<0.000000e+00> : vector<16x8xf32>
    %11 = tpu.matmul %9, %10, %cst_11 {dimension_numbers = #tpu.dot_dimension_numbers<[1], [0], [0], [1], [0, 0, 1, 1], [], []>} : vector<16x32xf32>, vector<32x8xf32>, vector<16x8xf32> -> vector<16x8xf32>
    %c0_12 = arith.constant 0 : index
    %c0_13 = arith.constant 0 : index
    %12 = vector.load %arg5[%c0_12, %c0_13] : memref<2x8xf32, #tpu.memory_space<vmem>>, vector<2x8xf32>
    %13 = vector.extract_strided_slice %12 {offsets = [0, 0], sizes = [1, 8], strides = [1, 1]} : vector<2x8xf32> to vector<1x8xf32>
    %14 = vector.broadcast %13 : vector<1x8xf32> to vector<16x8xf32>
    %15 = arith.mulf %11, %14 : vector<16x8xf32>
    %16 = vector.extract_strided_slice %12 {offsets = [1, 0], sizes = [1, 8], strides = [1, 1]} : vector<2x8xf32> to vector<1x8xf32>
    %17 = vector.broadcast %16 : vector<1x8xf32> to vector<16x8xf32>
    %18 = arith.addf %15, %17 : vector<16x8xf32>
    %cst_14 = arith.constant 0.000000e+00 : f32
    %19 = vector.broadcast %cst_14 : f32 to vector<16x8xf32>
    %20 = arith.maximumf %18, %19 : vector<16x8xf32>
    %c0_15 = arith.constant 0 : index
    %c0_16 = arith.constant 0 : index
    %21 = vector.load %arg14[%c0_15, %c0_16] : memref<16x16xf32, #tpu.memory_space<vmem>>, vector<16x16xf32>
    %cst_17 = arith.constant dense<0.000000e+00> : vector<16x8xf32>
    %22 = tpu.matmul %21, %20, %cst_17 {dimension_numbers = #tpu.dot_dimension_numbers<[1], [0], [0], [1], [0, 0, 1, 1], [], []>} : vector<16x16xf32>, vector<16x8xf32>, vector<16x8xf32> -> vector<16x8xf32>
    %c0_18 = arith.constant 0 : index
    %c0_19 = arith.constant 0 : index
    %23 = vector.load %arg15[%c0_18, %c0_19] : memref<16x16xf32, #tpu.memory_space<vmem>>, vector<16x16xf32>
    %cst_20 = arith.constant dense<0.000000e+00> : vector<16x8xf32>
    %24 = tpu.matmul %23, %20, %cst_20 {dimension_numbers = #tpu.dot_dimension_numbers<[1], [0], [0], [1], [0, 0, 1, 1], [], []>} : vector<16x16xf32>, vector<16x8xf32>, vector<16x8xf32> -> vector<16x8xf32>
    %c0_21 = arith.constant 0 : index
    %c0_22 = arith.constant 0 : index
    %c0_23 = arith.constant 0 : index
    %25 = vector.load %arg6[%c0_21, %c0_22, %c0_23] : memref<3x8x8xf32, #tpu.memory_space<vmem>>, vector<1x8x8xf32>
    %26 = vector.shape_cast %25 : vector<1x8x8xf32> to vector<8x8xf32>
    %cst_24 = arith.constant dense<0.000000e+00> : vector<16x8xf32>
    %27 = tpu.matmul %22, %26, %cst_24 {dimension_numbers = #tpu.dot_dimension_numbers<[1], [0], [0], [1], [0, 0, 1, 1], [], []>} : vector<16x8xf32>, vector<8x8xf32>, vector<16x8xf32> -> vector<16x8xf32>
    %c1 = arith.constant 1 : index
    %c0_25 = arith.constant 0 : index
    %c0_26 = arith.constant 0 : index
    %28 = vector.load %arg6[%c1, %c0_25, %c0_26] : memref<3x8x8xf32, #tpu.memory_space<vmem>>, vector<1x8x8xf32>
    %29 = vector.shape_cast %28 : vector<1x8x8xf32> to vector<8x8xf32>
    %cst_27 = arith.constant dense<0.000000e+00> : vector<16x8xf32>
    %30 = tpu.matmul %20, %29, %cst_27 {dimension_numbers = #tpu.dot_dimension_numbers<[1], [0], [0], [1], [0, 0, 1, 1], [], []>} : vector<16x8xf32>, vector<8x8xf32>, vector<16x8xf32> -> vector<16x8xf32>
    %31 = arith.addf %27, %30 : vector<16x8xf32>
    %c2 = arith.constant 2 : index
    %c0_28 = arith.constant 0 : index
    %c0_29 = arith.constant 0 : index
    %32 = vector.load %arg6[%c2, %c0_28, %c0_29] : memref<3x8x8xf32, #tpu.memory_space<vmem>>, vector<1x8x8xf32>
    %33 = vector.shape_cast %32 : vector<1x8x8xf32> to vector<8x8xf32>
    %cst_30 = arith.constant dense<0.000000e+00> : vector<16x8xf32>
    %34 = tpu.matmul %24, %33, %cst_30 {dimension_numbers = #tpu.dot_dimension_numbers<[1], [0], [0], [1], [0, 0, 1, 1], [], []>} : vector<16x8xf32>, vector<8x8xf32>, vector<16x8xf32> -> vector<16x8xf32>
    %35 = arith.addf %31, %34 : vector<16x8xf32>
    %c0_31 = arith.constant 0 : index
    %c0_32 = arith.constant 0 : index
    %36 = vector.load %arg7[%c0_31, %c0_32] : memref<2x8xf32, #tpu.memory_space<vmem>>, vector<2x8xf32>
    %37 = vector.extract_strided_slice %36 {offsets = [0, 0], sizes = [1, 8], strides = [1, 1]} : vector<2x8xf32> to vector<1x8xf32>
    %38 = vector.broadcast %37 : vector<1x8xf32> to vector<16x8xf32>
    %39 = arith.mulf %35, %38 : vector<16x8xf32>
    %40 = vector.extract_strided_slice %36 {offsets = [1, 0], sizes = [1, 8], strides = [1, 1]} : vector<2x8xf32> to vector<1x8xf32>
    %41 = vector.broadcast %40 : vector<1x8xf32> to vector<16x8xf32>
    %42 = arith.addf %39, %41 : vector<16x8xf32>
    %cst_33 = arith.constant 0.000000e+00 : f32
    %43 = vector.broadcast %cst_33 : f32 to vector<16x8xf32>
    %44 = arith.maximumf %42, %43 : vector<16x8xf32>
    %c0_34 = arith.constant 0 : index
    %c0_35 = arith.constant 0 : index
    %45 = vector.load %arg8[%c0_34, %c0_35] : memref<8x32xf32, #tpu.memory_space<vmem>>, vector<8x32xf32>
    %cst_36 = arith.constant dense<0.000000e+00> : vector<16x32xf32>
    %46 = tpu.matmul %44, %45, %cst_36 {dimension_numbers = #tpu.dot_dimension_numbers<[1], [0], [0], [1], [0, 0, 1, 1], [], []>} : vector<16x8xf32>, vector<8x32xf32>, vector<16x32xf32> -> vector<16x32xf32>
    %c0_37 = arith.constant 0 : index
    %c0_38 = arith.constant 0 : index
    %47 = vector.load %arg9[%c0_37, %c0_38] : memref<2x32xf32, #tpu.memory_space<vmem>>, vector<2x32xf32>
    %48 = vector.extract_strided_slice %47 {offsets = [0, 0], sizes = [1, 32], strides = [1, 1]} : vector<2x32xf32> to vector<1x32xf32>
    %49 = vector.broadcast %48 : vector<1x32xf32> to vector<16x32xf32>
    %50 = arith.mulf %46, %49 : vector<16x32xf32>
    %51 = vector.extract_strided_slice %47 {offsets = [1, 0], sizes = [1, 32], strides = [1, 1]} : vector<2x32xf32> to vector<1x32xf32>
    %52 = vector.broadcast %51 : vector<1x32xf32> to vector<16x32xf32>
    %53 = arith.addf %50, %52 : vector<16x32xf32>
    %54 = arith.addf %53, %9 : vector<16x32xf32>
    %cst_39 = arith.constant 0.000000e+00 : f32
    %55 = vector.broadcast %cst_39 : f32 to vector<16x32xf32>
    %56 = arith.maximumf %54, %55 : vector<16x32xf32>
    %c0_40 = arith.constant 0 : index
    %c0_41 = arith.constant 0 : index
    %57 = vector.load %arg16[%c0_40, %c0_41] : memref<2x16xf32, #tpu.memory_space<vmem>>, vector<2x16xf32>
    %cst_42 = arith.constant dense<0.000000e+00> : vector<2x32xf32>
    %58 = tpu.matmul %57, %56, %cst_42 {dimension_numbers = #tpu.dot_dimension_numbers<[1], [0], [0], [1], [0, 0, 1, 1], [], []>} : vector<2x16xf32>, vector<16x32xf32>, vector<2x32xf32> -> vector<2x32xf32>
    %c0_43 = arith.constant 0 : index
    %c0_44 = arith.constant 0 : index
    %59 = vector.load %arg10[%c0_43, %c0_44] : memref<32x16xf32, #tpu.memory_space<vmem>>, vector<32x16xf32>
    %cst_45 = arith.constant dense<0.000000e+00> : vector<2x16xf32>
    %60 = tpu.matmul %58, %59, %cst_45 {dimension_numbers = #tpu.dot_dimension_numbers<[1], [0], [0], [1], [0, 0, 1, 1], [], []>} : vector<2x32xf32>, vector<32x16xf32>, vector<2x16xf32> -> vector<2x16xf32>
    %c0_46 = arith.constant 0 : index
    %c0_47 = arith.constant 0 : index
    %61 = vector.load %arg11[%c0_46, %c0_47] : memref<1x16xf32, #tpu.memory_space<vmem>>, vector<1x16xf32>
    %62 = vector.broadcast %61 : vector<1x16xf32> to vector<2x16xf32>
    %63 = arith.addf %60, %62 : vector<2x16xf32>
    %c0_48 = arith.constant 0 : index
    %c0_49 = arith.constant 0 : index
    %64 = vector.load %arg12[%c0_48, %c0_49] : memref<16x128xf32, #tpu.memory_space<vmem>>, vector<16x128xf32>
    %cst_50 = arith.constant dense<0.000000e+00> : vector<2x128xf32>
    %65 = tpu.matmul %63, %64, %cst_50 {dimension_numbers = #tpu.dot_dimension_numbers<[1], [0], [0], [1], [0, 0, 1, 1], [], []>} : vector<2x16xf32>, vector<16x128xf32>, vector<2x128xf32> -> vector<2x128xf32>
    %c0_51 = arith.constant 0 : index
    %c0_52 = arith.constant 0 : index
    %66 = vector.load %arg13[%c0_51, %c0_52] : memref<1x128xf32, #tpu.memory_space<vmem>>, vector<1x128xf32>
    %67 = vector.broadcast %66 : vector<1x128xf32> to vector<2x128xf32>
    %68 = arith.addf %65, %67 : vector<2x128xf32>
    %c0_53 = arith.constant 0 : index
    %c0_54 = arith.constant 0 : index
    %69 = vector.load %arg17[%c0_53, %c0_54] : memref<2x128xf32, #tpu.memory_space<vmem>>, vector<2x128xf32>
    tpu.vector_store %arg17[%c0_53, %c0_54], %68 {strides = array<i32>} : memref<2x128xf32, #tpu.memory_space<vmem>>, vector<2x128xf32>,
    return
  }
}

</mosaic_0001>

<bundles_post_ra>
// kernel: cnn_head_forward.1
= control target key start
LH: loop header
LB: loop body
LE: loop exit
PB: predicated region body
PF: predicated region fallthrough
CT: control target
= control target key end

     0   :  { %s1465_s0 = inlined_call_operand.vmem [shape: f32[16,1024], index: 0, kind: input, shape index: {}]   ;;  %s1466_s1 = inlined_call_operand.vmem [shape: f32[1024,4], index: 1, kind: input, shape index: {}]   ;;  %s1467_s2 = inlined_call_operand.vmem [shape: f32[4,32], index: 2, kind: input, shape index: {}]   ;;  %s1468_s3 = inlined_call_operand.vmem [shape: f32[1,32], index: 3, kind: input, shape index: {}]   ;;  %s1469_s4 = inlined_call_operand.vmem [shape: f32[32,8], index: 4, kind: input, shape index: {}]   ;;  %s1470_s5 = inlined_call_operand.vmem [shape: f32[2,8], index: 5, kind: input, shape index: {}]   ;;  %s1471_s6 = inlined_call_operand.vmem [shape: f32[3,8,8], index: 6, kind: input, shape index: {}]   ;;  %s1472_s7 = inlined_call_operand.vmem [shape: f32[2,8], index: 7, kind: input, shape index: {}]   ;;  %s1473_s8 = inlined_call_operand.vmem [shape: f32[8,32], index: 8, kind: input, shape index: {}]   ;;  %s1474_s9 = inlined_call_operand.vmem [shape: f32[2,32], index: 9, kind: input, shape index: {}]   ;;  %s1475_s10 = inlined_call_operand.vmem [shape: f32[32,16], index: 10, kind: input, shape index: {}]   ;;  %s1476_s11 = inlined_call_operand.vmem [shape: f32[1,16], index: 11, kind: input, shape index: {}]   ;;  %s1477_s12 = inlined_call_operand.vmem [shape: f32[16,128], index: 12, kind: input, shape index: {}]   ;;  %s1478_s13 = inlined_call_operand.vmem [shape: f32[1,128], index: 13, kind: input, shape index: {}]   ;;  %s1479_s14 = inlined_call_operand.vmem [shape: f32[16,16], index: 14, kind: input, shape index: {}]   ;;  %s1480_s15 = inlined_call_operand.vmem [shape: f32[16,16], index: 15, kind: input, shape index: {}]   ;;  %s1481_s16 = inlined_call_operand.vmem [shape: f32[2,16], index: 16, kind: input, shape index: {}]   ;;  %s1482_s17 = inlined_call_operand.hbm [shape: f32[2,128], index: 17, kind: output, shape index: {}]  }
   0x1   :  { %1485 = sst [smem:[#allocation5_spill]] %s1465_s0 }
   0x2   :  { %1486 = sst [smem:[#allocation6_spill]] %s1466_s1 }
   0x3   :  { %s1487_s26 = sld [smem:[#allocation6_spill]] }
   0x4   :  { %s1488_s24 = sld [smem:[#allocation5_spill]] }
   0x9   :  { %v88_v0 = vld [vmem:[%s1487_s26 + $0x78] sm:$0xff]  ;;  %v87_v2 = vld [vmem:[%s1487_s26 + $0x70] sm:$0xff]  ;;  %v86_v6 = vld [vmem:[%s1487_s26 + $0x68] sm:$0xff] }
   0xa   :  { %v120_v1 = vld [vmem:[%s1487_s26 + $0x178] sm:$0xff]  ;;  %201 = vmatpush.msra.mxu0 %v88_v0  ;;  %v119_v4 = vld [vmem:[%s1487_s26 + $0x170] sm:$0xff]  ;;  %v118_v8 = vld [vmem:[%s1487_s26 + $0x168] sm:$0xff] }
   0xb   :  { %247 = vmatpush.msra.mxu2 %v120_v1  ;;  %v104_v3 = vld [vmem:[%s1487_s26 + $0xf8] sm:$0xff]  ;;  %v103_v7 = vld [vmem:[%s1487_s26 + $0xf0] sm:$0xff]  ;;  %v102_v10 = vld [vmem:[%s1487_s26 + $0xe8] sm:$0xff] }
   0xc   :  { %v136_v5 = vld [vmem:[%s1487_s26 + $0x1f8] sm:$0xff]  ;;  %224 = vmatpush.msra.mxu1 %v104_v3  ;;  %202 = vmatpush.msra.mxu0 %v87_v2  ;;  %v135_v9 = vld [vmem:[%s1487_s26 + $0x1f0] sm:$0xff]  ;;  %v85_v11 = vld [vmem:[%s1487_s26 + $0x60] sm:$0xff] }
   0xd   :  { %270 = vmatpush.msra.mxu3 %v136_v5  ;;  %248 = vmatpush.msra.mxu2 %v119_v4  ;;  %v117_v12 = vld [vmem:[%s1487_s26 + $0x160] sm:$0xff]  ;;  %v134_v13 = vld [vmem:[%s1487_s26 + $0x1e8] sm:$0xff]  ;;  %v84_v16 = vld [vmem:[%s1487_s26 + $0x58] sm:$0xff] }
   0xe   :  { %225 = vmatpush.msra.mxu1 %v103_v7  ;;  %203 = vmatpush.msra.mxu0 %v86_v6  ;;  %v101_v14 = vld [vmem:[%s1487_s26 + $0xe0] sm:$0xff]  ;;  %v116_v17 = vld [vmem:[%s1487_s26 + $0x158] sm:$0xff]  ;;  %v83_v20 = vld [vmem:[%s1487_s26 + $0x50] sm:$0xff] }
   0xf   :  { %271 = vmatpush.msra.mxu3 %v135_v9  ;;  %249 = vmatpush.msra.mxu2 %v118_v8  ;;  %v133_v15 = vld [vmem:[%s1487_s26 + $0x1e0] sm:$0xff]  ;;  %v100_v18 = vld [vmem:[%s1487_s26 + $0xd8] sm:$0xff]  ;;  %v115_v21 = vld [vmem:[%s1487_s26 + $0x150] sm:$0xff] }
  0x10   :  { %226 = vmatpush.msra.mxu1 %v102_v10  ;;  %204 = vmatpush.msra.mxu0 %v85_v11  ;;  %v132_v19 = vld [vmem:[%s1487_s26 + $0x1d8] sm:$0xff]  ;;  %v99_v22 = vld [vmem:[%s1487_s26 + $0xd0] sm:$0xff]  ;;  %v82_v24 = vld [vmem:[%s1487_s26 + $0x48] sm:$0xff] }
  0x11   :  { %272 = vmatpush.msra.mxu3 %v134_v13  ;;  %250 = vmatpush.msra.mxu2 %v117_v12  ;;  %v131_v23 = vld [vmem:[%s1487_s26 + $0x1d0] sm:$0xff]  ;;  %v114_v25 = vld [vmem:[%s1487_s26 + $0x148] sm:$0xff]  ;;  %v81_v28 = vld [vmem:[%s1487_s26 + $0x40] sm:$0xff] }
  0x12   :  { %227 = vmatpush.msra.mxu1 %v101_v14  ;;  %205 = vmatpush.msra.mxu0 %v84_v16  ;;  %v98_v26 = vld [vmem:[%s1487_s26 + $0xc8] sm:$0xff]  ;;  %v113_v29 = vld [vmem:[%s1487_s26 + $0x140] sm:$0xff]  ;;  %v80_v32 = vld [vmem:[%s1487_s26 + $0x38] sm:$0xff] }
  0x13   :  { %273 = vmatpush.msra.mxu3 %v133_v15  ;;  %251 = vmatpush.msra.mxu2 %v116_v17  ;;  %v130_v27 = vld [vmem:[%s1487_s26 + $0x1c8] sm:$0xff]  ;;  %v97_v30 = vld [vmem:[%s1487_s26 + $0xc0] sm:$0xff]  ;;  %v112_v33 = vld [vmem:[%s1487_s26 + $0x138] sm:$0xff] }
  0x14   :  { %228 = vmatpush.msra.mxu1 %v100_v18  ;;  %206 = vmatpush.msra.mxu0 %v83_v20  ;;  %v129_v31 = vld [vmem:[%s1487_s26 + $0x1c0] sm:$0xff]  ;;  %v96_v34 = vld [vmem:[%s1487_s26 + $0xb8] sm:$0xff]  ;;  %v79_v36 = vld [vmem:[%s1487_s26 + $0x30] sm:$0xff] }
  0x15   :  { %274 = vmatpush.msra.mxu3 %v132_v19  ;;  %252 = vmatpush.msra.mxu2 %v115_v21  ;;  %v128_v35 = vld [vmem:[%s1487_s26 + $0x1b8] sm:$0xff]  ;;  %v111_v37 = vld [vmem:[%s1487_s26 + $0x130] sm:$0xff]  ;;  %v78_v40 = vld [vmem:[%s1487_s26 + $0x28] sm:$0xff] }
  0x16   :  { %229 = vmatpush.msra.mxu1 %v99_v22  ;;  %207 = vmatpush.msra.mxu0 %v82_v24  ;;  %v95_v38 = vld [vmem:[%s1487_s26 + $0xb0] sm:$0xff]  ;;  %v110_v41 = vld [vmem:[%s1487_s26 + $0x128] sm:$0xff]  ;;  %v77_v44 = vld [vmem:[%s1487_s26 + $0x20] sm:$0xff] }
  0x17   :  { %275 = vmatpush.msra.mxu3 %v131_v23  ;;  %253 = vmatpush.msra.mxu2 %v114_v25  ;;  %v127_v39 = vld [vmem:[%s1487_s26 + $0x1b0] sm:$0xff]  ;;  %v94_v42 = vld [vmem:[%s1487_s26 + $0xa8] sm:$0xff]  ;;  %v109_v45 = vld [vmem:[%s1487_s26 + $0x120] sm:$0xff] }
  0x18   :  { %230 = vmatpush.msra.mxu1 %v98_v26  ;;  %208 = vmatpush.msra.mxu0 %v81_v28  ;;  %v126_v43 = vld [vmem:[%s1487_s26 + $0x1a8] sm:$0xff]  ;;  %v93_v46 = vld [vmem:[%s1487_s26 + $0xa0] sm:$0xff]  ;;  %v76_v48 = vld [vmem:[%s1487_s26 + $0x18] sm:$0xff] }
  0x19   :  { %276 = vmatpush.msra.mxu3 %v130_v27  ;;  %254 = vmatpush.msra.mxu2 %v113_v29  ;;  %v125_v47 = vld [vmem:[%s1487_s26 + $0x1a0] sm:$0xff]  ;;  %v108_v49 = vld [vmem:[%s1487_s26 + $0x118] sm:$0xff]  ;;  %v75_v52 = vld [vmem:[%s1487_s26 + $0x10] sm:$0xff] }
  0x1a   :  { %231 = vmatpush.msra.mxu1 %v97_v30  ;;  %209 = vmatpush.msra.mxu0 %v80_v32  ;;  %v92_v50 = vld [vmem:[%s1487_s26 + $0x98] sm:$0xff]  ;;  %v107_v53 = vld [vmem:[%s1487_s26 + $0x110] sm:$0xff]  ;;  %v74_v56 = vld [vmem:[%s1487_s26 + $0x8] sm:$0xff] }
  0x1b   :  { %277 = vmatpush.msra.mxu3 %v129_v31  ;;  %255 = vmatpush.msra.mxu2 %v112_v33  ;;  %v124_v51 = vld [vmem:[%s1487_s26 + $0x198] sm:$0xff]  ;;  %v91_v54 = vld [vmem:[%s1487_s26 + $0x90] sm:$0xff]  ;;  %v106_v57 = vld [vmem:[%s1487_s26 + $0x108] sm:$0xff] }
  0x1c   :  { %232 = vmatpush.msra.mxu1 %v96_v34  ;;  %210 = vmatpush.msra.mxu0 %v79_v36  ;;  %v123_v55 = vld [vmem:[%s1487_s26 + $0x190] sm:$0xff]  ;;  %v90_v58 = vld [vmem:[%s1487_s26 + $0x88] sm:$0xff]  ;;  %v73_v60 = vld [vmem:[%s1487_s26] sm:$0xff] }
  0x1d   :  { %278 = vmatpush.msra.mxu3 %v128_v35  ;;  %256 = vmatpush.msra.mxu2 %v111_v37  ;;  %v122_v59 = vld [vmem:[%s1487_s26 + $0x188] sm:$0xff]  ;;  %v105_v61 = vld [vmem:[%s1487_s26 + $0x100] sm:$0xff]  ;;  %v152_v62 = vld [vmem:[%s1487_s26 + $0x278] sm:$0xff] }
  0x1e   :  { %233 = vmatpush.msra.mxu1 %v95_v38  ;;  %211 = vmatpush.msra.mxu0 %v78_v40  ;;  %v184_v63 = vld [vmem:[%s1487_s26 + $0x378] sm:$0xff]  ;;  %v89_v0 = vld [vmem:[%s1487_s26 + $0x80] sm:$0xff]  ;;  %v151_v2 = vld [vmem:[%s1487_s26 + $0x270] sm:$0xff] }
  0x1f   :  { %279 = vmatpush.msra.mxu3 %v127_v39  ;;  %257 = vmatpush.msra.mxu2 %v110_v41  ;;  %v121_v1 = vld [vmem:[%s1487_s26 + $0x180] sm:$0xff]  ;;  %v168_v3 = vld [vmem:[%s1487_s26 + $0x2f8] sm:$0xff]  ;;  %v183_v4 = vld [vmem:[%s1487_s26 + $0x370] sm:$0xff] }
  0x20   :  { %234 = vmatpush.msra.mxu1 %v94_v42  ;;  %212 = vmatpush.msra.mxu0 %v77_v44  ;;  %v200_v5 = vld [vmem:[%s1487_s26 + $0x3f8] sm:$0xff]  ;;  %v150_v6 = vld [vmem:[%s1487_s26 + $0x268] sm:$0xff]  ;;  %v167_v7 = vld [vmem:[%s1487_s26 + $0x2f0] sm:$0xff] }
  0x21   :  { %280 = vmatpush.msra.mxu3 %v126_v43  ;;  %258 = vmatpush.msra.mxu2 %v109_v45  ;;  %v182_v8 = vld [vmem:[%s1487_s26 + $0x368] sm:$0xff]  ;;  %v199_v9 = vld [vmem:[%s1487_s26 + $0x3f0] sm:$0xff]  ;;  %v149_v10 = vld [vmem:[%s1487_s26 + $0x260] sm:$0xff] }
  0x22   :  { %235 = vmatpush.msra.mxu1 %v93_v46  ;;  %213 = vmatpush.msra.mxu0 %v76_v48  ;;  %v166_v11 = vld [vmem:[%s1487_s26 + $0x2e8] sm:$0xff]  ;;  %v181_v12 = vld [vmem:[%s1487_s26 + $0x360] sm:$0xff]  ;;  %v148_v14 = vld [vmem:[%s1487_s26 + $0x258] sm:$0xff] }
  0x23   :  { %281 = vmatpush.msra.mxu3 %v125_v47  ;;  %259 = vmatpush.msra.mxu2 %v108_v49  ;;  %v198_v13 = vld [vmem:[%s1487_s26 + $0x3e8] sm:$0xff]  ;;  %v165_v15 = vld [vmem:[%s1487_s26 + $0x2e0] sm:$0xff]  ;;  %v180_v16 = vld [vmem:[%s1487_s26 + $0x358] sm:$0xff] }
  0x24   :  { %236 = vmatpush.msra.mxu1 %v92_v50  ;;  %214 = vmatpush.msra.mxu0 %v75_v52  ;;  %v197_v17 = vld [vmem:[%s1487_s26 + $0x3e0] sm:$0xff]  ;;  %v147_v18 = vld [vmem:[%s1487_s26 + $0x250] sm:$0xff]  ;;  %v164_v19 = vld [vmem:[%s1487_s26 + $0x2d8] sm:$0xff] }
  0x25   :  { %282 = vmatpush.msra.mxu3 %v124_v51  ;;  %260 = vmatpush.msra.mxu2 %v107_v53  ;;  %v179_v20 = vld [vmem:[%s1487_s26 + $0x350] sm:$0xff]  ;;  %v196_v21 = vld [vmem:[%s1487_s26 + $0x3d8] sm:$0xff]  ;;  %v146_v22 = vld [vmem:[%s1487_s26 + $0x248] sm:$0xff] }
  0x26   :  { %237 = vmatpush.msra.mxu1 %v91_v54  ;;  %215 = vmatpush.msra.mxu0 %v74_v56  ;;  %v163_v23 = vld [vmem:[%s1487_s26 + $0x2d0] sm:$0xff]  ;;  %v178_v24 = vld [vmem:[%s1487_s26 + $0x348] sm:$0xff]  ;;  %v145_v27 = vld [vmem:[%s1487_s26 + $0x240] sm:$0xff] }
  0x27   :  { %283 = vmatpush.msra.mxu3 %v123_v55  ;;  %261 = vmatpush.msra.mxu2 %v106_v57  ;;  %v195_v25 = vld [vmem:[%s1487_s26 + $0x3d0] sm:$0xff]  ;;  %v162_v28 = vld [vmem:[%s1487_s26 + $0x2c8] sm:$0xff]  ;;  %v177_v29 = vld [vmem:[%s1487_s26 + $0x340] sm:$0xff] }
  0x28   :  { %238 = vmatpush.msra.mxu1 %v90_v58  ;;  %216 = vmatpush.msra.mxu0 %v73_v60  ;;  %v59_v26 = vld [vmem:[%s1488_s24 + $0x10] sm:$0xff]  ;;  %v194_v30 = vld [vmem:[%s1487_s26 + $0x3c8] sm:$0xff]  ;;  %v57_v31 = vld [vmem:[%s1488_s24] sm:$0xff] }
  0x29   :  { %284 = vmatpush.msra.mxu3 %v122_v59  ;;  %262 = vmatpush.msra.mxu2 %v105_v61  ;;  %v60_v32 = vld [vmem:[%s1488_s24 + $0x18] sm:$0xff]  ;;  %v161_v34 = vld [vmem:[%s1487_s26 + $0x2c0] sm:$0xff]  ;;  %v58_v37 = vld [vmem:[%s1488_s24 + $0x8] sm:$0xff] }
  0x2a   :  { %293 = vmatpush.msrb.mxu0 %v152_v62  ;;  %239 = vmatpush.msra.mxu1 %v89_v0  ;;  %v144_v33 = vld [vmem:[%s1487_s26 + $0x238] sm:$0xff]  ;;  %v193_v36 = vld [vmem:[%s1487_s26 + $0x3c0] sm:$0xff]  ;;  %v143_v38 = vld [vmem:[%s1487_s26 + $0x230] sm:$0xff] }
  0x2b   :  { %339 = vmatpush.msrb.mxu2 %v184_v63  ;;  %285 = vmatpush.msra.mxu3 %v121_v1  ;;  %v176_v35 = vld [vmem:[%s1487_s26 + $0x338] sm:$0xff] }
  0x2c   :  { %294 = vmatpush.msrb.mxu0 %v151_v2  ;;  %316 = vmatpush.msrb.mxu1 %v168_v3  ;;  %v160_v39 = vld [vmem:[%s1487_s26 + $0x2b8] sm:$0xff] }
  0x2d   :  { %340 = vmatpush.msrb.mxu2 %v183_v4  ;;  %362 = vmatpush.msrb.mxu3 %v200_v5 }
  0x2e   :  { %295 = vmatpush.msrb.mxu0 %v150_v6  ;;  %317 = vmatpush.msrb.mxu1 %v167_v7 }
  0x2f   :  { %341 = vmatpush.msrb.mxu2 %v182_v8  ;;  %363 = vmatpush.msrb.mxu3 %v199_v9 }
  0x30   :  { %296 = vmatpush.msrb.mxu0 %v149_v10  ;;  %318 = vmatpush.msrb.mxu1 %v166_v11 }
  0x31   :  { %342 = vmatpush.msrb.mxu2 %v181_v12  ;;  %364 = vmatpush.msrb.mxu3 %v198_v13 }
  0x32   :  { %297 = vmatpush.msrb.mxu0 %v148_v14  ;;  %319 = vmatpush.msrb.mxu1 %v165_v15 }
  0x33   :  { %343 = vmatpush.msrb.mxu2 %v180_v16  ;;  %365 = vmatpush.msrb.mxu3 %v197_v17 }
  0x34   :  { %298 = vmatpush.msrb.mxu0 %v147_v18  ;;  %320 = vmatpush.msrb.mxu1 %v164_v19 }
  0x35   :  { %344 = vmatpush.msrb.mxu2 %v179_v20  ;;  %366 = vmatpush.msrb.mxu3 %v196_v21 }
  0x36   :  { %299 = vmatpush.msrb.mxu0 %v146_v22  ;;  %321 = vmatpush.msrb.mxu1 %v163_v23 }
  0x37   :  { %345 = vmatpush.msrb.mxu2 %v178_v24  ;;  %367 = vmatpush.msrb.mxu3 %v195_v25 }
  0x38   :  { %263 = vmatmul.f32.vlgmr.msra.gmra.mxu2 %v59_v26  ;;  %300 = vmatpush.msrb.mxu0 %v145_v27 }
  0x39   :  { %322 = vmatpush.msrb.mxu1 %v162_v28  ;;  %346 = vmatpush.msrb.mxu2 %v177_v29 }
  0x3a   :  { %368 = vmatpush.msrb.mxu3 %v194_v30  ;;  %217 = vmatmul.f32.vlgmr.msra.gmra.mxu0 %v57_v31 }
  0x3b   :  { %286 = vmatmul.f32.vlgmr.msra.gmra.mxu3 %v60_v32  ;;  %301 = vmatpush.msrb.mxu0 %v144_v33 }
  0x3c   :  { %22 = vsyncpa [#allocation3], 0  ;;  %323 = vmatpush.msrb.mxu1 %v161_v34  ;;  %347 = vmatpush.msrb.mxu2 %v176_v35  ;;  %v175_v40 = vld [vmem:[%s1487_s26 + $0x330] sm:$0xff]  ;;  %v192_v41 = vld [vmem:[%s1487_s26 + $0x3b8] sm:$0xff]  ;;  %vm397_vm0 = vcmask 1043456   ;;  %vm390_vm1 = vcmask 31744  }
  0x3d   :  { %369 = vmatpush.msrb.mxu3 %v193_v36  ;;  %240 = vmatmul.f32.vlgmr.msra.gmra.mxu1 %v58_v37  ;;  %v142_v42 = vld [vmem:[%s1487_s26 + $0x228] sm:$0xff]  ;;  %v159_v43 = vld [vmem:[%s1487_s26 + $0x2b0] sm:$0xff]  ;;  %v141_v47 = vld [vmem:[%s1487_s26 + $0x220] sm:$0xff]  ;;  %vm430_vm2 = vcmask 261120   ;;  %vm535_vm3 = vcmask 64512   ;;  %vm471_vm4 = vcmask 130048  }
  0x3e   :  { %302 = vmatpush.msrb.mxu0 %v143_v38  ;;  %324 = vmatpush.msrb.mxu1 %v160_v39  ;;  %v174_v44 = vld [vmem:[%s1487_s26 + $0x328] sm:$0xff]  ;;  %v191_v45 = vld [vmem:[%s1487_s26 + $0x3b0] sm:$0xff]  ;;  %v173_v49 = vld [vmem:[%s1487_s26 + $0x320] sm:$0xff]  ;;  %s830_s30 = smov [#allocation2]  }
  0x3f   :  { %348 = vmatpush.msrb.mxu2 %v175_v40  ;;  %370 = vmatpush.msrb.mxu3 %v192_v41  ;;  %v67_v46 = vld [vmem:[%s1488_s24 + $0x50] sm:$0xff]  ;;  %v158_v48 = vld [vmem:[%s1487_s26 + $0x2a8] sm:$0xff]  ;;  %v65_v51 = vld [vmem:[%s1488_s24 + $0x40] sm:$0xff]  ;;  %s767_s18 = sshll.u32 %s830_s30, 4  ;;  %s768_s18 = int_to_ptr.vmem [resolvable:$true] %s767_s18 }
  0x40   :  { %303 = vmatpush.msrb.mxu0 %v142_v42  ;;  %325 = vmatpush.msrb.mxu1 %v159_v43  ;;  %v190_v50 = vld [vmem:[%s1487_s26 + $0x3a8] sm:$0xff]  ;;  %v68_v52 = vld [vmem:[%s1488_s24 + $0x58] sm:$0xff]  ;;  %v157_v54 = vld [vmem:[%s1487_s26 + $0x2a0] sm:$0xff] }
  0x41   :  { %349 = vmatpush.msrb.mxu2 %v174_v44  ;;  %371 = vmatpush.msrb.mxu3 %v191_v45  ;;  %v140_v53 = vld [vmem:[%s1487_s26 + $0x218] sm:$0xff]  ;;  %v189_v56 = vld [vmem:[%s1487_s26 + $0x3a0] sm:$0xff]  ;;  %v66_v57 = vld [vmem:[%s1488_s24 + $0x48] sm:$0xff] }
  0x42   :  { %266 = vmatmul.f32.gmra.mxu2 %v67_v46  ;;  %304 = vmatpush.msrb.mxu0 %v141_v47  ;;  %v172_v55 = vld [vmem:[%s1487_s26 + $0x318] sm:$0xff]  ;;  %v139_v58 = vld [vmem:[%s1487_s26 + $0x210] sm:$0xff]  ;;  %v138_v62 = vld [vmem:[%s1487_s26 + $0x208] sm:$0xff] }
  0x43   :  { %326 = vmatpush.msrb.mxu1 %v158_v48  ;;  %350 = vmatpush.msrb.mxu2 %v173_v49  ;;  %v156_v59 = vld [vmem:[%s1487_s26 + $0x298] sm:$0xff]  ;;  %v171_v60 = vld [vmem:[%s1487_s26 + $0x310] sm:$0xff]  ;;  %v170_v0 = vld [vmem:[%s1487_s26 + $0x308] sm:$0xff] }
  0x44   :  { %372 = vmatpush.msrb.mxu3 %v190_v50  ;;  %220 = vmatmul.f32.gmra.mxu0 %v65_v51  ;;  %v188_v61 = vld [vmem:[%s1487_s26 + $0x398] sm:$0xff]  ;;  %v155_v63 = vld [vmem:[%s1487_s26 + $0x290] sm:$0xff]  ;;  %v137_v2 = vld [vmem:[%s1487_s26 + $0x200] sm:$0xff] }
  0x45   :  { %289 = vmatmul.f32.gmra.mxu3 %v68_v52  ;;  %305 = vmatpush.msrb.mxu0 %v140_v53  ;;  %v187_v1 = vld [vmem:[%s1487_s26 + $0x390] sm:$0xff]  ;;  %v154_v3 = vld [vmem:[%s1487_s26 + $0x288] sm:$0xff]  ;;  %v169_v4 = vld [vmem:[%s1487_s26 + $0x300] sm:$0xff] }
  0x46   :  { %327 = vmatpush.msrb.mxu1 %v157_v54  ;;  %351 = vmatpush.msrb.mxu2 %v172_v55  ;;  %v186_v5 = vld [vmem:[%s1487_s26 + $0x388] sm:$0xff]  ;;  %v61_v6 = vld [vmem:[%s1488_s24 + $0x20] sm:$0xff]  ;;  %v63_v7 = vld [vmem:[%s1488_s24 + $0x30] sm:$0xff] }
  0x47   :  { %373 = vmatpush.msrb.mxu3 %v189_v56  ;;  %243 = vmatmul.f32.gmra.mxu1 %v66_v57  ;;  %v153_v8 = vld [vmem:[%s1487_s26 + $0x280] sm:$0xff]  ;;  %v62_v10 = vld [vmem:[%s1488_s24 + $0x28] sm:$0xff]  ;;  %v64_v11 = vld [vmem:[%s1488_s24 + $0x38] sm:$0xff] }
  0x48   :  { %306 = vmatpush.msrb.mxu0 %v139_v58  ;;  %328 = vmatpush.msrb.mxu1 %v156_v59  ;;  %v185_v9 = vld [vmem:[%s1487_s26 + $0x380] sm:$0xff]  ;;  %v71_v13 = vld [vmem:[%s1488_s24 + $0x70] sm:$0xff]  ;;  %v70_v14 = vld [vmem:[%s1488_s24 + $0x68] sm:$0xff] }
  0x49   :  { %352 = vmatpush.msrb.mxu2 %v171_v60  ;;  %374 = vmatpush.msrb.mxu3 %v188_v61  ;;  %v69_v12 = vld [vmem:[%s1488_s24 + $0x60] sm:$0xff]  ;;  %v72_v15 = vld [vmem:[%s1488_s24 + $0x78] sm:$0xff]  ;;  %v428_v48 = vld [vmem:[%s1469_s4 + $0x10] sm:$0xff] }
  0x4a   :  { %307 = vmatpush.msrb.mxu0 %v138_v62  ;;  %329 = vmatpush.msrb.mxu1 %v155_v63  ;;  %v385_v16 = vld [vmem:[%s1467_s2] sm:$0xf]  ;;  %v429_v19 = vld [vmem:[%s1469_s4 + $0x18] sm:$0xff]  ;;  %v427_v49 = vld [vmem:[%s1469_s4 + $0x8] sm:$0xff] }
  0x4b   :  { %353 = vmatpush.msrb.mxu2 %v170_v0  ;;  %375 = vmatpush.msrb.mxu3 %v187_v1  ;;  %v426_v50 = vld [vmem:[%s1469_s4] sm:$0xff]  ;;  %v787_v58 = vld [vmem:[%s1471_s6 + $0x8] sm:$0xff] }
  0x4c   :  { %308 = vmatpush.msrb.mxu0 %v137_v2  ;;  %330 = vmatpush.msrb.mxu1 %v154_v3  ;;  %v801_v51 = vld [vmem:[%s1468_s3] ss:$0 sm:$0xff] }
  0x4d   :  { %354 = vmatpush.msrb.mxu2 %v169_v4  ;;  %376 = vmatpush.msrb.mxu3 %v186_v5  ;;  %v460_v59 = vld [vmem:[%s1470_s5] sm:$0x3] }
  0x4e   :  { %309 = vmatmul.f32.vlgmr.msrb.gmra.mxu0 %v61_v6  ;;  %355 = vmatmul.f32.vlgmr.msrb.gmra.mxu2 %v63_v7  ;;  %v461_v60 = vperm.slane %v460_v59, 0  ;;  %v464_v61 = vperm.slane %v460_v59, 1  ;;  %v469_v6 = vld [vmem:[%s1479_s14] sm:$0xff] }
  0x4f   :  { %331 = vmatpush.msrb.mxu1 %v153_v8  ;;  %377 = vmatpush.msrb.mxu3 %v185_v9  ;;  %v501_v7 = vld [vmem:[%s1480_s15] sm:$0xff]  ;;  %v470_v8 = vld [vmem:[%s1479_s14 + $0x8] sm:$0xff]  ;;  %s769_s14 = sshll.u32 %s1482_s17, 4  ;;  %s770_s14 = int_to_ptr.hbm [resolvable:$true] %s769_s14 }
  0x50   :  { %332 = vmatmul.f32.vlgmr.msrb.gmra.mxu1 %v62_v10  ;;  %378 = vmatmul.f32.vlgmr.msrb.gmra.mxu3 %v64_v11  ;;  %v502_v9 = vld [vmem:[%s1480_s15 + $0x8] sm:$0xff]  ;;  %v792_v10 = vld [vmem:[%s1471_s6 + $0x10] sm:$0xff]  ;;  %v532_v11 = vld [vmem:[%s1471_s6] sm:$0xff] }
  0x51   :  { %778 = vmatpush.msk.msra.mxu0 %vm397_vm0, %v385_v16  ;;  %449 = vmatpush.msra.mxu1 %v429_v19  ;;  %v636_v16 = vld [vmem:[%s1473_s8] sm:$0xff] }
  0x52   :  { %v627_v19 = vld [vmem:[%s1472_s7] sm:$0x3] }
  0x53   :  { %450 = vmatpush.msra.mxu1 %v428_v48  ;;  %557 = vmatpush.msrb.mxu0 %v787_v58  ;;  %v733_v58 = vld [vmem:[%s1477_s12 + $0x8] sm:$0xff] }
  0x55   :  { %451 = vmatpush.msra.mxu1 %v427_v49 }
  0x56   :  { %312 = vmatmul.f32.gmra.mxu0 %v69_v12  ;;  %358 = vmatmul.f32.gmra.mxu2 %v71_v13 }
  0x57   :  { %452 = vmatpush.msra.mxu1 %v426_v50 }
  0x58   :  { %335 = vmatmul.f32.gmra.mxu1 %v70_v14  ;;  %381 = vmatmul.f32.gmra.mxu3 %v72_v15 }
  0x59   :  { %586 = vmatpush.msrb.mxu1 %v532_v11 }
  0xb7   :  { %v218_v17 = vpop.f32.mrf.mxu0 }
  0xba   :  { %v241_v18 = vpop.f32.mrf.mxu1 }
  0xbb   :  { %v264_v20 = vpop.f32.mrf.mxu2  ;;  %v242_v23 = vadd.f32 %v241_v18, %v218_v17 }
  0xbd   :  { %v265_v25 = vadd.f32 %v264_v20, %v242_v23 }
  0xbe   :  { %v287_v21 = vpop.f32.mrf.mxu3 }
  0xbf   :  { %v288_v27 = vadd.f32 %v287_v21, %v265_v25  ;;  %v628_v21 = vperm.slane %v627_v19, 0 }
  0xc1   :  { %v221_v22 = vpop.f32.mrf.mxu0 }
  0xc4   :  { %v244_v24 = vpop.f32.mrf.mxu1 }
  0xc5   :  { %v267_v26 = vpop.f32.mrf.mxu2  ;;  %v245_v28 = vadd.f32 %v244_v24, %v221_v22  ;;  %v631_v24 = vperm.slane %v627_v19, 1 }
  0xc7   :  { %v268_v33 = vadd.f32 %v267_v26, %v245_v28 }
  0xc8   :  { %v290_v29 = vpop.f32.mrf.mxu3 }
  0xc9   :  { %v291_v36 = vadd.f32 %v290_v29, %v268_v33 }
  0xcb   :  { %v310_v30 = vpop.f32.mrf.mxu0 }
  0xcc   :  { %v311_v31 = vadd.f32 %v310_v30, %v288_v27 }
  0xcd   :  { %v333_v32 = vpop.f32.mrf.mxu1 }
  0xce   :  { %v334_v34 = vadd.f32 %v333_v32, %v311_v31 }
  0xd1   :  { %v356_v35 = vpop.f32.mrf.mxu2 }
  0xd2   :  { %v357_v37 = vadd.f32 %v356_v35, %v334_v34 }
  0xd3   :  { %v313_v38 = vpop.f32.mrf.mxu0  ;;  %v379_v39 = vpop.f32.mrf.mxu3 }
  0xd4   :  { %v314_v40 = vadd.f32 %v313_v38, %v291_v36  ;;  %v380_v41 = vadd.f32 %v379_v39, %v357_v37  ;;  %v704_v36 = vld [vmem:[%s1475_s10 + $0x18] sm:$0xff]  ;;  %v703_v37 = vld [vmem:[%s1475_s10 + $0x10] sm:$0xff]  ;;  %v702_v38 = vld [vmem:[%s1475_s10 + $0x8] sm:$0xff] }
  0xd5   :  { %v336_v42 = vpop.f32.mrf.mxu1  ;;  %v701_v39 = vld [vmem:[%s1475_s10] sm:$0xff] }
  0xd6   :  { %779 = vmatmul.msk.f32.vlgmr.msra.gmra.mxu0 %vm390_vm1, %v380_v41  ;;  %v337_v43 = vadd.f32 %v336_v42, %v314_v40  ;;  %v666_v40 = vld [vmem:[%s1474_s9] sm:$0x3] }
  0xd7   :  { %v667_v42 = vperm.slane %v666_v40, 0 }
  0xd9   :  { %v359_v44 = vpop.f32.mrf.mxu2 }
  0xda   :  { %v360_v45 = vadd.f32 %v359_v44, %v337_v43  ;;  %v670_v44 = vperm.slane %v666_v40, 1 }
  0xdb   :  { %v382_v46 = vpop.f32.mrf.mxu3 }
  0xdc   :  { %v383_v47 = vadd.f32 %v382_v46, %v360_v45 }
  0xde   :  { %780 = vmatmul.msk.f32.gmra.mxu0 %vm390_vm1, %v383_v47 }
 0x153   :  { %v418_v52 = vpop.f32.mrf.mxu0 }
 0x154   :  { %v1371_v53 = vadd.f32 %v801_v51, %v418_v52 }
 0x156   :  { %v424_v54 = vmax.f32 %v1371_v53, 0.0 }
 0x158   :  { %781 = vmatmul.msk.f32.vlgmr.msra.gmra.mxu1 %vm430_vm2, %v424_v54 }
 0x159   :  { %724 = vmatpush.msra.mxu1 %v704_v36 }
 0x15b   :  { %v421_v55 = vpop.f32.mrf.mxu0  ;;  %725 = vmatpush.msra.mxu1 %v703_v37 }
 0x15c   :  { %v1377_v56 = vadd.f32 %v801_v51, %v421_v55  ;;  %v677_v55 = vld [vmem:[%s1481_s16] sm:$0x3] }
 0x15d   :  { %726 = vmatpush.msra.mxu1 %v702_v38 }
 0x15e   :  { %v425_v57 = vmax.f32 %v1377_v56, 0.0  ;;  %v732_v56 = vld [vmem:[%s1477_s12] sm:$0xff] }
 0x15f   :  { %727 = vmatpush.msra.mxu1 %v701_v39 }
 0x160   :  { %782 = vmatmul.msk.f32.gmra.mxu1 %vm430_vm2, %v425_v57 }
 0x1d5   :  { %v454_v62 = vpop.f32.mrf.mxu1 }
 0x1d6   :  { %v462_v63 = vmul.f32 %v461_v60, %v454_v62 }
 0x1d8   :  { %v465_v0 = vadd.f32 %v464_v61, %v462_v63 }
 0x1da   :  { %v467_v1 = vmax.f32 %v465_v0, 0.0 }
 0x1dc   :  { %788 = vmatmul.msk.f32.vlgmr.msrb.gmra.mxu0 %vm535_vm3, %v467_v1 }
 0x1dd   :  { %v457_v2 = vpop.f32.mrf.mxu1 }
 0x1de   :  { %v463_v3 = vmul.f32 %v461_v60, %v457_v2  ;;  %v803_v60 = vld [vmem:[%s1478_s13] ss:$0 sm:$0xff] }
 0x1e0   :  { %v466_v4 = vadd.f32 %v464_v61, %v463_v3 }
 0x1e2   :  { %v468_v5 = vmax.f32 %v466_v4, 0.0 }
 0x1e4   :  { %492 = vmatpush.msra.mxu2 %v468_v5  ;;  %523 = vmatpush.msra.mxu3 %v468_v5 }
 0x1e5   :  { %789 = vmatmul.msk.f32.gmra.mxu0 %vm535_vm3, %v468_v5 }
 0x1e6   :  { %493 = vmatpush.msra.mxu2 %v467_v1  ;;  %524 = vmatpush.msra.mxu3 %v467_v1 }
 0x1e7   :  { %783 = vmatmul.msk.f32.vlgmr.msra.gmra.mxu2 %vm471_vm4, %v469_v6  ;;  %785 = vmatmul.msk.f32.vlgmr.msra.gmra.mxu3 %vm471_vm4, %v501_v7 }
 0x1e8   :  { %617 = vmatpush.msrb.mxu2 %v792_v10  ;;  %658 = vmatpush.msrb.mxu3 %v636_v16 }
 0x1ea   :  { %755 = vmatpush.msra.mxu2 %v733_v58 }
 0x1ec   :  { %756 = vmatpush.msra.mxu2 %v732_v56 }
 0x1ef   :  { %784 = vmatmul.msk.f32.gmra.mxu2 %vm471_vm4, %v470_v8  ;;  %786 = vmatmul.msk.f32.gmra.mxu3 %vm471_vm4, %v502_v9 }
 0x259   :  { %v559_v18 = vpop.f32.mrf.mxu0 }
 0x262   :  { %v562_v28 = vpop.f32.mrf.mxu0 }
 0x26a   :  { %v495_v12 = vpop.f32.mrf.mxu2  ;;  %v526_v13 = vpop.f32.mrf.mxu3 }
 0x26b   :  { %790 = vmatmul.msk.f32.vlgmr.msrb.gmra.mxu1 %vm535_vm3, %v495_v12  ;;  %793 = vmatmul.msk.f32.vlgmr.msrb.gmra.mxu2 %vm535_vm3, %v526_v13 }
 0x272   :  { %v498_v14 = vpop.f32.mrf.mxu2  ;;  %v529_v15 = vpop.f32.mrf.mxu3 }
 0x273   :  { %791 = vmatmul.msk.f32.gmra.mxu1 %vm535_vm3, %v498_v14  ;;  %794 = vmatmul.msk.f32.gmra.mxu2 %vm535_vm3, %v529_v15 }
 0x2e8   :  { %v588_v17 = vpop.f32.mrf.mxu1 }
 0x2e9   :  { %v589_v20 = vadd.f32 %v588_v17, %v559_v18 }
 0x2ee   :  { %v619_v22 = vpop.f32.mrf.mxu2 }
 0x2ef   :  { %v625_v23 = vadd.f32 %v619_v22, %v589_v20 }
 0x2f0   :  { %v591_v26 = vpop.f32.mrf.mxu1 }
 0x2f1   :  { %v629_v25 = vmul.f32 %v628_v21, %v625_v23  ;;  %v592_v30 = vadd.f32 %v591_v26, %v562_v28 }
 0x2f3   :  { %v632_v27 = vadd.f32 %v631_v24, %v629_v25 }
 0x2f5   :  { %v634_v29 = vmax.f32 %v632_v27, 0.0 }
 0x2f6   :  { %v622_v31 = vpop.f32.mrf.mxu2 }
 0x2f7   :  { %v626_v32 = vadd.f32 %v622_v31, %v592_v30  ;;  %795 = vmatmul.msk.f32.vlgmr.msrb.gmra.mxu3 %vm535_vm3, %v634_v29 }
 0x2f9   :  { %v630_v33 = vmul.f32 %v628_v21, %v626_v32 }
 0x2fb   :  { %v633_v34 = vadd.f32 %v631_v24, %v630_v33 }
 0x2fd   :  { %v635_v35 = vmax.f32 %v633_v34, 0.0 }
 0x2ff   :  { %796 = vmatmul.msk.f32.gmra.mxu3 %vm535_vm3, %v635_v35 }
 0x37a   :  { %v660_v41 = vpop.f32.mrf.mxu3 }
 0x37b   :  { %v668_v43 = vmul.f32 %v667_v42, %v660_v41 }
 0x37d   :  { %v671_v46 = vadd.f32 %v670_v44, %v668_v43 }
 0x37f   :  { %v673_v50 = vadd.f32 %v671_v46, %v424_v54  ;;  %v802_v54 = vld [vmem:[%s1476_s11] ss:$0 sm:$0xff] }
 0x381   :  { %v675_v52 = vmax.f32 %v673_v50, 0.0 }
 0x382   :  { %v663_v45 = vpop.f32.mrf.mxu3 }
 0x383   :  { %v669_v47 = vmul.f32 %v667_v42, %v663_v45 }
 0x385   :  { %v672_v48 = vadd.f32 %v670_v44, %v669_v47 }
 0x387   :  { %v674_v49 = vadd.f32 %v672_v48, %v425_v57 }
 0x389   :  { %v676_v51 = vmax.f32 %v674_v49, 0.0 }
 0x38b   :  { %695 = vmatpush.msra.mxu0 %v676_v51 }
 0x38d   :  { %696 = vmatpush.msra.mxu0 %v675_v52 }
 0x38e   :  { %797 = vmatmul.msk.f32.vlgmr.msra.gmra.mxu0 %vm471_vm4, %v677_v55 }
 0x40b   :  { %v698_v53 = vpop.f32.mrf.mxu0 }
 0x40c   :  { %798 = vmatmul.msk.f32.vlgmr.msra.gmra.mxu1 %vm430_vm2, %v698_v53 }
 0x489   :  { %v729_v57 = vpop.f32.mrf.mxu1 }
 0x48a   :  { %v730_v59 = vadd.f32 %v802_v54, %v729_v57 }
 0x48c   :  { %799 = vmatmul.msk.f32.vlgmr.msra.gmra.mxu2 %vm471_vm4, %v730_v59 }
 0x50f   :  { %v758_v61 = vpop.f32.mrf.mxu2 }
 0x510   :  { %v759_v62 = vadd.f32 %v803_v60, %v758_v61 }
 0x512   :  { %761 = vst [vmem:[#allocation2] sm:$0x3] %v759_v62 }
 0x513   :  { %772 = dma.vmem_to_hbm [thread:$0]  %s768_s18, 32, %s770_s14, [#allocation3]  }
 0x514   :  { %828 = dma.done.wait [#allocation3], 32  }
 0x515   :  { %829 = vsyncadd [#allocation3], 4294967264 }
 0x516   :  { %777 = vsyncpa [#allocation3], 1 }

</bundles_post_ra>
